<compile_context>
chip_gen: v7x
topology: tpu7x:2x2x1
jax: 0.10.0
libtpu: 0.0.40
codegen_flags: <defaults>
</compile_context>

<pallas_src>
import jax
import jax.numpy as jnp
from jax import lax
from jax.experimental import pallas as pl
from jax.experimental.pallas import tpu as pltpu

# ----- small, module-consistent problem sizes -----
BATCH = 2
SEQ = 8
EMB = 32
HEADS = 4
HEAD_DIM = EMB // HEADS

LANES = 128
ROWS = BATCH * SEQ                                   # 16 flattened (b, n) rows


def _round_up(v, m):
    return ((v + m - 1) // m) * m


QKV_PAD = _round_up(3 * EMB, LANES)                  # 96 -> 128 (lane-dense qkv result)


def mha_kernel(x_ref, wqkv_ref, bqkv_ref, wproj_ref, bproj_ref, out_ref):
    """Single grid step over the whole flattened batch.

    x_ref:     (ROWS, EMB)
    wqkv_ref:  (EMB, QKV_PAD)   columns ordered (qkv, h, d), zero-padded past 3*EMB
    bqkv_ref:  (1, QKV_PAD)
    wproj_ref: (EMB, EMB)       pre-scaled by 1/sqrt(EMB)
    bproj_ref: (1, EMB)
    out_ref:   (ROWS, EMB)
    """
    x = x_ref[...]                                                       # (ROWS, EMB)

    # Single QKV projection for the whole batch (MXU); full 128-lane result.
    qkv = jnp.dot(x, wqkv_ref[...], preferred_element_type=jnp.float32) + bqkv_ref[...]

    bias = bproj_ref[...]                                                # (1, EMB)

    # B*H tiny attention problems, fully unrolled with static slices; per-head partial
    # output projections accumulate in registers (no VMEM scratch roundtrip).
    for b in range(BATCH):
        r0 = b * SEQ
        acc = jnp.zeros((SEQ, EMB), jnp.float32)
        for h in range(HEADS):
            c0 = h * HEAD_DIM
            qh = qkv[r0:r0 + SEQ, c0:c0 + HEAD_DIM]                      # (SEQ, D)
            kh = qkv[r0:r0 + SEQ, EMB + c0:EMB + c0 + HEAD_DIM]          # (SEQ, D)
            vh = qkv[r0:r0 + SEQ, 2 * EMB + c0:2 * EMB + c0 + HEAD_DIM]  # (SEQ, D)

            # energy = einsum('qd,kd->qk') via the transposed-operand MXU path
            # (no explicit XLU transpose of kh).
            energy = lax.dot_general(qh, kh, (((1,), (1,)), ((), ())),
                                     preferred_element_type=jnp.float32)  # (SEQ, SEQ)

            # softmax over last axis; the module's 1/sqrt(emb_size) scale is folded
            # into wproj_ref (exactly distributes through the linear projection).
            m = jnp.max(energy, axis=-1, keepdims=True)
            e = jnp.exp(energy - m)
            inv = pl.reciprocal(jnp.sum(e, axis=-1, keepdims=True), approx=True)  # EUP
            att = e * inv

            head_out = jnp.dot(att, vh, preferred_element_type=jnp.float32)       # (SEQ, D)
            acc = acc + jnp.dot(head_out, wproj_ref[c0:c0 + HEAD_DIM, :],
                                preferred_element_type=jnp.float32)               # (SEQ, E)

        out_ref[r0:r0 + SEQ, :] = (acc + bias).astype(out_ref.dtype)


def prepare_params(w_qkv_t, b_qkv, w_proj_t, b_proj):
    """ONE-TIME weight prep (layout plumbing). Call once offline / at model build time,
    not per forward call."""
    E = EMB
    # Permute qkv output columns from PyTorch rearrange order (h, d, qkv) to (qkv, h, d),
    # then zero-pad 3E -> 128 lanes.
    which = jnp.arange(3)[:, None, None]
    hh = jnp.arange(HEADS)[None, :, None]
    dd = jnp.arange(HEAD_DIM)[None, None, :]
    perm = (hh * HEAD_DIM * 3 + dd * 3 + which).reshape(-1)              # (3E,)
    w_qkv_p = jnp.pad(w_qkv_t[:, perm], ((0, 0), (0, QKV_PAD - 3 * E)))  # (E, 128)
    b_qkv_p = jnp.pad(b_qkv[perm], (0, QKV_PAD - 3 * E)).reshape(1, QKV_PAD)

    # Fold the 1/sqrt(emb_size) softmax scale into the projection weight (exact).
    w_proj_p = w_proj_t / (E ** 0.5)                                     # (E, E)
    b_proj_p = b_proj.reshape(1, E)
    return w_qkv_p, b_qkv_p, w_proj_p, b_proj_p


def mha_pallas(x, w_qkv_p, b_qkv_p, w_proj_p, b_proj_p):
    """x: (B, N, E).  Remaining args are the pre-prepped parameters from prepare_params."""
    B, N, E = x.shape
    assert (B, N, E) == (BATCH, SEQ, EMB)

    x2d = x.reshape(ROWS, E)                                             # contiguous: free

    flops = (2 * ROWS * E * QKV_PAD                                # qkv projection
             + BATCH * HEADS * (4 * SEQ * SEQ * HEAD_DIM)          # q@k^T and att@v
             + BATCH * HEADS * 2 * SEQ * HEAD_DIM * E)             # per-head output proj
    bytes_accessed = 4 * (x2d.size + w_qkv_p.size + b_qkv_p.size
                          + w_proj_p.size + b_proj_p.size + ROWS * E)

    out2d = pl.pallas_call(
        mha_kernel,
        out_shape=jax.ShapeDtypeStruct((ROWS, E), x.dtype),
        grid=(1,),
        in_specs=[
            pl.BlockSpec((ROWS, E), lambda i: (0, 0)),
            pl.BlockSpec((E, QKV_PAD), lambda i: (0, 0)),
            pl.BlockSpec((1, QKV_PAD), lambda i: (0, 0)),
            pl.BlockSpec((E, E), lambda i: (0, 0)),
            pl.BlockSpec((1, E), lambda i: (0, 0)),
        ],
        out_specs=pl.BlockSpec((ROWS, E), lambda i: (0, 0)),
        compiler_params=pltpu.CompilerParams(
            dimension_semantics=("arbitrary",)),
        cost_estimate=pl.CostEstimate(
            flops=flops,
            transcendentals=BATCH * HEADS * SEQ * SEQ,
            bytes_accessed=bytes_accessed),
    )(x2d, w_qkv_p, b_qkv_p, w_proj_p, b_proj_p)

    return out2d.reshape(B, N, E)


def mha_reference(x, w_qkv_t, b_qkv, w_proj_t, b_proj):
    """Pure-JAX mirror of the PyTorch forward (mask=None, dropout=0)."""
    B, N, E = x.shape
    qkv = x @ w_qkv_t + b_qkv                                  # (B, N, 3E)
    # rearrange 'b n (h d qkv) -> (qkv) b h n d'
    qkv = qkv.reshape(B, N, HEADS, HEAD_DIM, 3)
    qkv = jnp.transpose(qkv, (4, 0, 2, 1, 3))                  # (3, B, H, N, D)
    q, k, v = qkv[0], qkv[1], qkv[2]
    energy = jnp.einsum('bhqd,bhkd->bhqk', q, k)
    att = jax.nn.softmax(energy, axis=-1) / (E ** 0.5)
    out = jnp.einsum('bhal,bhlv->bhav', att, v)
    out = jnp.transpose(out, (0, 2, 1, 3)).reshape(B, N, E)    # 'b h n d -> b n (h d)'
    return out @ w_proj_t + b_proj


if __name__ == "__main__":
    key = jax.random.PRNGKey(0)
    kx, k1, k2, k3, k4 = jax.random.split(key, 5)

    x = jax.random.normal(kx, (BATCH, SEQ, EMB), dtype=jnp.float32)

    # Deterministic synthetic parameters (PyTorch Linear-style uniform init).
    bound_qkv = 1.0 / (EMB ** 0.5)
    w_qkv_t = jax.random.uniform(k1, (EMB, 3 * EMB), jnp.float32, -bound_qkv, bound_qkv)
    b_qkv = jax.random.uniform(k2, (3 * EMB,), jnp.float32, -bound_qkv, bound_qkv)
    bound_p = 1.0 / (EMB ** 0.5)
    w_proj_t = jax.random.uniform(k3, (EMB, EMB), jnp.float32, -bound_p, bound_p)
    b_proj = jax.random.uniform(k4, (EMB,), jnp.float32, -bound_p, bound_p)

    # One-time weight prep (hoisted out of the per-call path).
    prepped = prepare_params(w_qkv_t, b_qkv, w_proj_t, b_proj)
    prepped = jax.tree_util.tree_map(jax.block_until_ready, prepped)

    mha = jax.jit(mha_pallas)
    out = mha(x, *prepped)
    out = jax.block_until_ready(out)

    ref = mha_reference(x, w_qkv_t, b_qkv, w_proj_t, b_proj)
    assert out.shape == (BATCH, SEQ, EMB)
    # Tolerance relaxed for pl.reciprocal(approx=True) in the softmax denominator.
    assert jnp.allclose(out, ref, atol=1e-3, rtol=1e-3), "mismatch vs JAX reference"

    print("KERNEL_OK")
</pallas_src>

<mosaic_0001>
module attributes {stable_mosaic.version = 11 : i64} {
  func.func @mha_kernel(%arg0: i32, %arg1: memref<16x32xf32, #tpu.memory_space<vmem>>, %arg2: memref<32x128xf32, #tpu.memory_space<vmem>>, %arg3: memref<1x128xf32, #tpu.memory_space<vmem>>, %arg4: memref<32x32xf32, #tpu.memory_space<vmem>>, %arg5: memref<1x32xf32, #tpu.memory_space<vmem>>, %arg6: memref<16x32xf32, #tpu.memory_space<vmem>>) attributes {dimension_semantics = [#tpu.dimension_semantics<arbitrary>], iteration_bounds = array<i64: 1>, scalar_prefetch = 0 : i64, scratch_operands = 0 : i64, tpu.core_type = #tpu.core_type<tc>, window_params = [{pipeline_mode = #tpu.pipeline_mode<synchronous>, transform_indices = @transform_0, window_bounds = array<i64: 16, 32>}, {pipeline_mode = #tpu.pipeline_mode<synchronous>, transform_indices = @transform_1, window_bounds = array<i64: 32, 128>}, {pipeline_mode = #tpu.pipeline_mode<synchronous>, transform_indices = @transform_2, window_bounds = array<i64: 1, 128>}, {pipeline_mode = #tpu.pipeline_mode<synchronous>, transform_indices = @transform_3, window_bounds = array<i64: 32, 32>}, {pipeline_mode = #tpu.pipeline_mode<synchronous>, transform_indices = @transform_4, window_bounds = array<i64: 1, 32>}, {pipeline_mode = #tpu.pipeline_mode<synchronous>, transform_indices = @transform_5, window_bounds = array<i64: 16, 32>}]} {
    %c0 = arith.constant 0 : index
    %c0_0 = arith.constant 0 : index
    %0 = vector.load %arg1[%c0, %c0_0] : memref<16x32xf32, #tpu.memory_space<vmem>>, vector<16x32xf32>
    %c0_1 = arith.constant 0 : index
    %c0_2 = arith.constant 0 : index
    %1 = vector.load %arg2[%c0_1, %c0_2] : memref<32x128xf32, #tpu.memory_space<vmem>>, vector<32x128xf32>
    %cst = arith.constant dense<0.000000e+00> : vector<16x128xf32>
    %2 = tpu.matmul %0, %1, %cst {dimension_numbers = #tpu.dot_dimension_numbers<[1], [0], [0], [1], [0, 0, 1, 1], [], []>} : vector<16x32xf32>, vector<32x128xf32>, vector<16x128xf32> -> vector<16x128xf32>
    %c0_3 = arith.constant 0 : index
    %c0_4 = arith.constant 0 : index
    %3 = vector.load %arg3[%c0_3, %c0_4] : memref<1x128xf32, #tpu.memory_space<vmem>>, vector<1x128xf32>
    %4 = vector.broadcast %3 : vector<1x128xf32> to vector<16x128xf32>
    %5 = arith.addf %2, %4 : vector<16x128xf32>
    %c0_5 = arith.constant 0 : index
    %c0_6 = arith.constant 0 : index
    %6 = vector.load %arg5[%c0_5, %c0_6] : memref<1x32xf32, #tpu.memory_space<vmem>>, vector<1x32xf32>
    %cst_7 = arith.constant 0.000000e+00 : f32
    %7 = vector.broadcast %cst_7 : f32 to vector<8x32xf32>
    %8 = vector.extract_strided_slice %5 {offsets = [0, 0], sizes = [8, 8], strides = [1, 1]} : vector<16x128xf32> to vector<8x8xf32>
    %9 = vector.extract_strided_slice %5 {offsets = [0, 32], sizes = [8, 8], strides = [1, 1]} : vector<16x128xf32> to vector<8x8xf32>
    %10 = vector.extract_strided_slice %5 {offsets = [0, 64], sizes = [8, 8], strides = [1, 1]} : vector<16x128xf32> to vector<8x8xf32>
    %cst_8 = arith.constant dense<0.000000e+00> : vector<8x8xf32>
    %11 = tpu.matmul %8, %9, %cst_8 {dimension_numbers = #tpu.dot_dimension_numbers<[1], [1], [0], [0], [0, 0, 1, 0], [], []>} : vector<8x8xf32>, vector<8x8xf32>, vector<8x8xf32> -> vector<8x8xf32>
    %cst_9 = arith.constant dense<0xFF800000> : vector<8xf32>
    %12 = vector.multi_reduction <maximumf>, %11, %cst_9 [1] : vector<8x8xf32> to vector<8xf32>
    %13 = vector.shape_cast %12 : vector<8xf32> to vector<8x1xf32>
    %14 = vector.broadcast %13 : vector<8x1xf32> to vector<8x8xf32>
    %15 = arith.subf %11, %14 : vector<8x8xf32>
    %16 = math.exp %15 : vector<8x8xf32>
    %cst_10 = arith.constant dense<0.000000e+00> : vector<8xf32>
    %17 = vector.multi_reduction <add>, %16, %cst_10 [1] : vector<8x8xf32> to vector<8xf32>
    %18 = vector.shape_cast %17 : vector<8xf32> to vector<8x1xf32>
    %19 = tpu.reciprocal %18 {approx = true} : vector<8x1xf32> -> vector<8x1xf32>
    %20 = vector.broadcast %19 : vector<8x1xf32> to vector<8x8xf32>
    %21 = arith.mulf %16, %20 : vector<8x8xf32>
    %cst_11 = arith.constant dense<0.000000e+00> : vector<8x8xf32>
    %22 = tpu.matmul %21, %10, %cst_11 {dimension_numbers = #tpu.dot_dimension_numbers<[1], [0], [0], [1], [0, 0, 1, 1], [], []>} : vector<8x8xf32>, vector<8x8xf32>, vector<8x8xf32> -> vector<8x8xf32>
    %c0_12 = arith.constant 0 : index
    %c0_13 = arith.constant 0 : index
    %23 = vector.load %arg4[%c0_12, %c0_13] : memref<32x32xf32, #tpu.memory_space<vmem>>, vector<8x32xf32>
    %cst_14 = arith.constant dense<0.000000e+00> : vector<8x32xf32>
    %24 = tpu.matmul %22, %23, %cst_14 {dimension_numbers = #tpu.dot_dimension_numbers<[1], [0], [0], [1], [0, 0, 1, 1], [], []>} : vector<8x8xf32>, vector<8x32xf32>, vector<8x32xf32> -> vector<8x32xf32>
    %25 = arith.addf %7, %24 : vector<8x32xf32>
    %26 = vector.extract_strided_slice %5 {offsets = [0, 8], sizes = [8, 8], strides = [1, 1]} : vector<16x128xf32> to vector<8x8xf32>
    %27 = vector.extract_strided_slice %5 {offsets = [0, 40], sizes = [8, 8], strides = [1, 1]} : vector<16x128xf32> to vector<8x8xf32>
    %28 = vector.extract_strided_slice %5 {offsets = [0, 72], sizes = [8, 8], strides = [1, 1]} : vector<16x128xf32> to vector<8x8xf32>
    %cst_15 = arith.constant dense<0.000000e+00> : vector<8x8xf32>
    %29 = tpu.matmul %26, %27, %cst_15 {dimension_numbers = #tpu.dot_dimension_numbers<[1], [1], [0], [0], [0, 0, 1, 0], [], []>} : vector<8x8xf32>, vector<8x8xf32>, vector<8x8xf32> -> vector<8x8xf32>
    %cst_16 = arith.constant dense<0xFF800000> : vector<8xf32>
    %30 = vector.multi_reduction <maximumf>, %29, %cst_16 [1] : vector<8x8xf32> to vector<8xf32>
    %31 = vector.shape_cast %30 : vector<8xf32> to vector<8x1xf32>
    %32 = vector.broadcast %31 : vector<8x1xf32> to vector<8x8xf32>
    %33 = arith.subf %29, %32 : vector<8x8xf32>
    %34 = math.exp %33 : vector<8x8xf32>
    %cst_17 = arith.constant dense<0.000000e+00> : vector<8xf32>
    %35 = vector.multi_reduction <add>, %34, %cst_17 [1] : vector<8x8xf32> to vector<8xf32>
    %36 = vector.shape_cast %35 : vector<8xf32> to vector<8x1xf32>
    %37 = tpu.reciprocal %36 {approx = true} : vector<8x1xf32> -> vector<8x1xf32>
    %38 = vector.broadcast %37 : vector<8x1xf32> to vector<8x8xf32>
    %39 = arith.mulf %34, %38 : vector<8x8xf32>
    %cst_18 = arith.constant dense<0.000000e+00> : vector<8x8xf32>
    %40 = tpu.matmul %39, %28, %cst_18 {dimension_numbers = #tpu.dot_dimension_numbers<[1], [0], [0], [1], [0, 0, 1, 1], [], []>} : vector<8x8xf32>, vector<8x8xf32>, vector<8x8xf32> -> vector<8x8xf32>
    %c8 = arith.constant 8 : index
    %c0_19 = arith.constant 0 : index
    %41 = vector.load %arg4[%c8, %c0_19] : memref<32x32xf32, #tpu.memory_space<vmem>>, vector<8x32xf32>
    %cst_20 = arith.constant dense<0.000000e+00> : vector<8x32xf32>
    %42 = tpu.matmul %40, %41, %cst_20 {dimension_numbers = #tpu.dot_dimension_numbers<[1], [0], [0], [1], [0, 0, 1, 1], [], []>} : vector<8x8xf32>, vector<8x32xf32>, vector<8x32xf32> -> vector<8x32xf32>
    %43 = arith.addf %25, %42 : vector<8x32xf32>
    %44 = vector.extract_strided_slice %5 {offsets = [0, 16], sizes = [8, 8], strides = [1, 1]} : vector<16x128xf32> to vector<8x8xf32>
    %45 = vector.extract_strided_slice %5 {offsets = [0, 48], sizes = [8, 8], strides = [1, 1]} : vector<16x128xf32> to vector<8x8xf32>
    %46 = vector.extract_strided_slice %5 {offsets = [0, 80], sizes = [8, 8], strides = [1, 1]} : vector<16x128xf32> to vector<8x8xf32>
    %cst_21 = arith.constant dense<0.000000e+00> : vector<8x8xf32>
    %47 = tpu.matmul %44, %45, %cst_21 {dimension_numbers = #tpu.dot_dimension_numbers<[1], [1], [0], [0], [0, 0, 1, 0], [], []>} : vector<8x8xf32>, vector<8x8xf32>, vector<8x8xf32> -> vector<8x8xf32>
    %cst_22 = arith.constant dense<0xFF800000> : vector<8xf32>
    %48 = vector.multi_reduction <maximumf>, %47, %cst_22 [1] : vector<8x8xf32> to vector<8xf32>
    %49 = vector.shape_cast %48 : vector<8xf32> to vector<8x1xf32>
    %50 = vector.broadcast %49 : vector<8x1xf32> to vector<8x8xf32>
    %51 = arith.subf %47, %50 : vector<8x8xf32>
    %52 = math.exp %51 : vector<8x8xf32>
    %cst_23 = arith.constant dense<0.000000e+00> : vector<8xf32>
    %53 = vector.multi_reduction <add>, %52, %cst_23 [1] : vector<8x8xf32> to vector<8xf32>
    %54 = vector.shape_cast %53 : vector<8xf32> to vector<8x1xf32>
    %55 = tpu.reciprocal %54 {approx = true} : vector<8x1xf32> -> vector<8x1xf32>
    %56 = vector.broadcast %55 : vector<8x1xf32> to vector<8x8xf32>
    %57 = arith.mulf %52, %56 : vector<8x8xf32>
    %cst_24 = arith.constant dense<0.000000e+00> : vector<8x8xf32>
    %58 = tpu.matmul %57, %46, %cst_24 {dimension_numbers = #tpu.dot_dimension_numbers<[1], [0], [0], [1], [0, 0, 1, 1], [], []>} : vector<8x8xf32>, vector<8x8xf32>, vector<8x8xf32> -> vector<8x8xf32>
    %c16 = arith.constant 16 : index
    %c0_25 = arith.constant 0 : index
    %59 = vector.load %arg4[%c16, %c0_25] : memref<32x32xf32, #tpu.memory_space<vmem>>, vector<8x32xf32>
    %cst_26 = arith.constant dense<0.000000e+00> : vector<8x32xf32>
    %60 = tpu.matmul %58, %59, %cst_26 {dimension_numbers = #tpu.dot_dimension_numbers<[1], [0], [0], [1], [0, 0, 1, 1], [], []>} : vector<8x8xf32>, vector<8x32xf32>, vector<8x32xf32> -> vector<8x32xf32>
    %61 = arith.addf %43, %60 : vector<8x32xf32>
    %62 = vector.extract_strided_slice %5 {offsets = [0, 24], sizes = [8, 8], strides = [1, 1]} : vector<16x128xf32> to vector<8x8xf32>
    %63 = vector.extract_strided_slice %5 {offsets = [0, 56], sizes = [8, 8], strides = [1, 1]} : vector<16x128xf32> to vector<8x8xf32>
    %64 = vector.extract_strided_slice %5 {offsets = [0, 88], sizes = [8, 8], strides = [1, 1]} : vector<16x128xf32> to vector<8x8xf32>
    %cst_27 = arith.constant dense<0.000000e+00> : vector<8x8xf32>
    %65 = tpu.matmul %62, %63, %cst_27 {dimension_numbers = #tpu.dot_dimension_numbers<[1], [1], [0], [0], [0, 0, 1, 0], [], []>} : vector<8x8xf32>, vector<8x8xf32>, vector<8x8xf32> -> vector<8x8xf32>
    %cst_28 = arith.constant dense<0xFF800000> : vector<8xf32>
    %66 = vector.multi_reduction <maximumf>, %65, %cst_28 [1] : vector<8x8xf32> to vector<8xf32>
    %67 = vector.shape_cast %66 : vector<8xf32> to vector<8x1xf32>
    %68 = vector.broadcast %67 : vector<8x1xf32> to vector<8x8xf32>
    %69 = arith.subf %65, %68 : vector<8x8xf32>
    %70 = math.exp %69 : vector<8x8xf32>
    %cst_29 = arith.constant dense<0.000000e+00> : vector<8xf32>
    %71 = vector.multi_reduction <add>, %70, %cst_29 [1] : vector<8x8xf32> to vector<8xf32>
    %72 = vector.shape_cast %71 : vector<8xf32> to vector<8x1xf32>
    %73 = tpu.reciprocal %72 {approx = true} : vector<8x1xf32> -> vector<8x1xf32>
    %74 = vector.broadcast %73 : vector<8x1xf32> to vector<8x8xf32>
    %75 = arith.mulf %70, %74 : vector<8x8xf32>
    %cst_30 = arith.constant dense<0.000000e+00> : vector<8x8xf32>
    %76 = tpu.matmul %75, %64, %cst_30 {dimension_numbers = #tpu.dot_dimension_numbers<[1], [0], [0], [1], [0, 0, 1, 1], [], []>} : vector<8x8xf32>, vector<8x8xf32>, vector<8x8xf32> -> vector<8x8xf32>
    %c24 = arith.constant 24 : index
    %c0_31 = arith.constant 0 : index
    %77 = vector.load %arg4[%c24, %c0_31] : memref<32x32xf32, #tpu.memory_space<vmem>>, vector<8x32xf32>
    %cst_32 = arith.constant dense<0.000000e+00> : vector<8x32xf32>
    %78 = tpu.matmul %76, %77, %cst_32 {dimension_numbers = #tpu.dot_dimension_numbers<[1], [0], [0], [1], [0, 0, 1, 1], [], []>} : vector<8x8xf32>, vector<8x32xf32>, vector<8x32xf32> -> vector<8x32xf32>
    %79 = arith.addf %61, %78 : vector<8x32xf32>
    %80 = vector.broadcast %6 : vector<1x32xf32> to vector<8x32xf32>
    %81 = arith.addf %79, %80 : vector<8x32xf32>
    %c0_33 = arith.constant 0 : index
    %c0_34 = arith.constant 0 : index
    %82 = vector.load %arg6[%c0_33, %c0_34] : memref<16x32xf32, #tpu.memory_space<vmem>>, vector<8x32xf32>
    tpu.vector_store %arg6[%c0_33, %c0_34], %81 {strides = array<i32>} : memref<16x32xf32, #tpu.memory_space<vmem>>, vector<8x32xf32>,
    %cst_35 = arith.constant 0.000000e+00 : f32
    %83 = vector.broadcast %cst_35 : f32 to vector<8x32xf32>
    %84 = vector.extract_strided_slice %5 {offsets = [8, 0], sizes = [8, 8], strides = [1, 1]} : vector<16x128xf32> to vector<8x8xf32>
    %85 = vector.extract_strided_slice %5 {offsets = [8, 32], sizes = [8, 8], strides = [1, 1]} : vector<16x128xf32> to vector<8x8xf32>
    %86 = vector.extract_strided_slice %5 {offsets = [8, 64], sizes = [8, 8], strides = [1, 1]} : vector<16x128xf32> to vector<8x8xf32>
    %cst_36 = arith.constant dense<0.000000e+00> : vector<8x8xf32>
    %87 = tpu.matmul %84, %85, %cst_36 {dimension_numbers = #tpu.dot_dimension_numbers<[1], [1], [0], [0], [0, 0, 1, 0], [], []>} : vector<8x8xf32>, vector<8x8xf32>, vector<8x8xf32> -> vector<8x8xf32>
    %cst_37 = arith.constant dense<0xFF800000> : vector<8xf32>
    %88 = vector.multi_reduction <maximumf>, %87, %cst_37 [1] : vector<8x8xf32> to vector<8xf32>
    %89 = vector.shape_cast %88 : vector<8xf32> to vector<8x1xf32>
    %90 = vector.broadcast %89 : vector<8x1xf32> to vector<8x8xf32>
    %91 = arith.subf %87, %90 : vector<8x8xf32>
    %92 = math.exp %91 : vector<8x8xf32>
    %cst_38 = arith.constant dense<0.000000e+00> : vector<8xf32>
    %93 = vector.multi_reduction <add>, %92, %cst_38 [1] : vector<8x8xf32> to vector<8xf32>
    %94 = vector.shape_cast %93 : vector<8xf32> to vector<8x1xf32>
    %95 = tpu.reciprocal %94 {approx = true} : vector<8x1xf32> -> vector<8x1xf32>
    %96 = vector.broadcast %95 : vector<8x1xf32> to vector<8x8xf32>
    %97 = arith.mulf %92, %96 : vector<8x8xf32>
    %cst_39 = arith.constant dense<0.000000e+00> : vector<8x8xf32>
    %98 = tpu.matmul %97, %86, %cst_39 {dimension_numbers = #tpu.dot_dimension_numbers<[1], [0], [0], [1], [0, 0, 1, 1], [], []>} : vector<8x8xf32>, vector<8x8xf32>, vector<8x8xf32> -> vector<8x8xf32>
    %c0_40 = arith.constant 0 : index
    %c0_41 = arith.constant 0 : index
    %99 = vector.load %arg4[%c0_40, %c0_41] : memref<32x32xf32, #tpu.memory_space<vmem>>, vector<8x32xf32>
    %cst_42 = arith.constant dense<0.000000e+00> : vector<8x32xf32>
    %100 = tpu.matmul %98, %99, %cst_42 {dimension_numbers = #tpu.dot_dimension_numbers<[1], [0], [0], [1], [0, 0, 1, 1], [], []>} : vector<8x8xf32>, vector<8x32xf32>, vector<8x32xf32> -> vector<8x32xf32>
    %101 = arith.addf %83, %100 : vector<8x32xf32>
    %102 = vector.extract_strided_slice %5 {offsets = [8, 8], sizes = [8, 8], strides = [1, 1]} : vector<16x128xf32> to vector<8x8xf32>
    %103 = vector.extract_strided_slice %5 {offsets = [8, 40], sizes = [8, 8], strides = [1, 1]} : vector<16x128xf32> to vector<8x8xf32>
    %104 = vector.extract_strided_slice %5 {offsets = [8, 72], sizes = [8, 8], strides = [1, 1]} : vector<16x128xf32> to vector<8x8xf32>
    %cst_43 = arith.constant dense<0.000000e+00> : vector<8x8xf32>
    %105 = tpu.matmul %102, %103, %cst_43 {dimension_numbers = #tpu.dot_dimension_numbers<[1], [1], [0], [0], [0, 0, 1, 0], [], []>} : vector<8x8xf32>, vector<8x8xf32>, vector<8x8xf32> -> vector<8x8xf32>
    %cst_44 = arith.constant dense<0xFF800000> : vector<8xf32>
    %106 = vector.multi_reduction <maximumf>, %105, %cst_44 [1] : vector<8x8xf32> to vector<8xf32>
    %107 = vector.shape_cast %106 : vector<8xf32> to vector<8x1xf32>
    %108 = vector.broadcast %107 : vector<8x1xf32> to vector<8x8xf32>
    %109 = arith.subf %105, %108 : vector<8x8xf32>
    %110 = math.exp %109 : vector<8x8xf32>
    %cst_45 = arith.constant dense<0.000000e+00> : vector<8xf32>
    %111 = vector.multi_reduction <add>, %110, %cst_45 [1] : vector<8x8xf32> to vector<8xf32>
    %112 = vector.shape_cast %111 : vector<8xf32> to vector<8x1xf32>
    %113 = tpu.reciprocal %112 {approx = true} : vector<8x1xf32> -> vector<8x1xf32>
    %114 = vector.broadcast %113 : vector<8x1xf32> to vector<8x8xf32>
    %115 = arith.mulf %110, %114 : vector<8x8xf32>
    %cst_46 = arith.constant dense<0.000000e+00> : vector<8x8xf32>
    %116 = tpu.matmul %115, %104, %cst_46 {dimension_numbers = #tpu.dot_dimension_numbers<[1], [0], [0], [1], [0, 0, 1, 1], [], []>} : vector<8x8xf32>, vector<8x8xf32>, vector<8x8xf32> -> vector<8x8xf32>
    %c8_47 = arith.constant 8 : index
    %c0_48 = arith.constant 0 : index
    %117 = vector.load %arg4[%c8_47, %c0_48] : memref<32x32xf32, #tpu.memory_space<vmem>>, vector<8x32xf32>
    %cst_49 = arith.constant dense<0.000000e+00> : vector<8x32xf32>
    %118 = tpu.matmul %116, %117, %cst_49 {dimension_numbers = #tpu.dot_dimension_numbers<[1], [0], [0], [1], [0, 0, 1, 1], [], []>} : vector<8x8xf32>, vector<8x32xf32>, vector<8x32xf32> -> vector<8x32xf32>
    %119 = arith.addf %101, %118 : vector<8x32xf32>
    %120 = vector.extract_strided_slice %5 {offsets = [8, 16], sizes = [8, 8], strides = [1, 1]} : vector<16x128xf32> to vector<8x8xf32>
    %121 = vector.extract_strided_slice %5 {offsets = [8, 48], sizes = [8, 8], strides = [1, 1]} : vector<16x128xf32> to vector<8x8xf32>
    %122 = vector.extract_strided_slice %5 {offsets = [8, 80], sizes = [8, 8], strides = [1, 1]} : vector<16x128xf32> to vector<8x8xf32>
    %cst_50 = arith.constant dense<0.000000e+00> : vector<8x8xf32>
    %123 = tpu.matmul %120, %121, %cst_50 {dimension_numbers = #tpu.dot_dimension_numbers<[1], [1], [0], [0], [0, 0, 1, 0], [], []>} : vector<8x8xf32>, vector<8x8xf32>, vector<8x8xf32> -> vector<8x8xf32>
    %cst_51 = arith.constant dense<0xFF800000> : vector<8xf32>
    %124 = vector.multi_reduction <maximumf>, %123, %cst_51 [1] : vector<8x8xf32> to vector<8xf32>
    %125 = vector.shape_cast %124 : vector<8xf32> to vector<8x1xf32>
    %126 = vector.broadcast %125 : vector<8x1xf32> to vector<8x8xf32>
    %127 = arith.subf %123, %126 : vector<8x8xf32>
    %128 = math.exp %127 : vector<8x8xf32>
    %cst_52 = arith.constant dense<0.000000e+00> : vector<8xf32>
    %129 = vector.multi_reduction <add>, %128, %cst_52 [1] : vector<8x8xf32> to vector<8xf32>
    %130 = vector.shape_cast %129 : vector<8xf32> to vector<8x1xf32>
    %131 = tpu.reciprocal %130 {approx = true} : vector<8x1xf32> -> vector<8x1xf32>
    %132 = vector.broadcast %131 : vector<8x1xf32> to vector<8x8xf32>
    %133 = arith.mulf %128, %132 : vector<8x8xf32>
    %cst_53 = arith.constant dense<0.000000e+00> : vector<8x8xf32>
    %134 = tpu.matmul %133, %122, %cst_53 {dimension_numbers = #tpu.dot_dimension_numbers<[1], [0], [0], [1], [0, 0, 1, 1], [], []>} : vector<8x8xf32>, vector<8x8xf32>, vector<8x8xf32> -> vector<8x8xf32>
    %c16_54 = arith.constant 16 : index
    %c0_55 = arith.constant 0 : index
    %135 = vector.load %arg4[%c16_54, %c0_55] : memref<32x32xf32, #tpu.memory_space<vmem>>, vector<8x32xf32>
    %cst_56 = arith.constant dense<0.000000e+00> : vector<8x32xf32>
    %136 = tpu.matmul %134, %135, %cst_56 {dimension_numbers = #tpu.dot_dimension_numbers<[1], [0], [0], [1], [0, 0, 1, 1], [], []>} : vector<8x8xf32>, vector<8x32xf32>, vector<8x32xf32> -> vector<8x32xf32>
    %137 = arith.addf %119, %136 : vector<8x32xf32>
    %138 = vector.extract_strided_slice %5 {offsets = [8, 24], sizes = [8, 8], strides = [1, 1]} : vector<16x128xf32> to vector<8x8xf32>
    %139 = vector.extract_strided_slice %5 {offsets = [8, 56], sizes = [8, 8], strides = [1, 1]} : vector<16x128xf32> to vector<8x8xf32>
    %140 = vector.extract_strided_slice %5 {offsets = [8, 88], sizes = [8, 8], strides = [1, 1]} : vector<16x128xf32> to vector<8x8xf32>
    %cst_57 = arith.constant dense<0.000000e+00> : vector<8x8xf32>
    %141 = tpu.matmul %138, %139, %cst_57 {dimension_numbers = #tpu.dot_dimension_numbers<[1], [1], [0], [0], [0, 0, 1, 0], [], []>} : vector<8x8xf32>, vector<8x8xf32>, vector<8x8xf32> -> vector<8x8xf32>
    %cst_58 = arith.constant dense<0xFF800000> : vector<8xf32>
    %142 = vector.multi_reduction <maximumf>, %141, %cst_58 [1] : vector<8x8xf32> to vector<8xf32>
    %143 = vector.shape_cast %142 : vector<8xf32> to vector<8x1xf32>
    %144 = vector.broadcast %143 : vector<8x1xf32> to vector<8x8xf32>
    %145 = arith.subf %141, %144 : vector<8x8xf32>
    %146 = math.exp %145 : vector<8x8xf32>
    %cst_59 = arith.constant dense<0.000000e+00> : vector<8xf32>
    %147 = vector.multi_reduction <add>, %146, %cst_59 [1] : vector<8x8xf32> to vector<8xf32>
    %148 = vector.shape_cast %147 : vector<8xf32> to vector<8x1xf32>
    %149 = tpu.reciprocal %148 {approx = true} : vector<8x1xf32> -> vector<8x1xf32>
    %150 = vector.broadcast %149 : vector<8x1xf32> to vector<8x8xf32>
    %151 = arith.mulf %146, %150 : vector<8x8xf32>
    %cst_60 = arith.constant dense<0.000000e+00> : vector<8x8xf32>
    %152 = tpu.matmul %151, %140, %cst_60 {dimension_numbers = #tpu.dot_dimension_numbers<[1], [0], [0], [1], [0, 0, 1, 1], [], []>} : vector<8x8xf32>, vector<8x8xf32>, vector<8x8xf32> -> vector<8x8xf32>
    %c24_61 = arith.constant 24 : index
    %c0_62 = arith.constant 0 : index
    %153 = vector.load %arg4[%c24_61, %c0_62] : memref<32x32xf32, #tpu.memory_space<vmem>>, vector<8x32xf32>
    %cst_63 = arith.constant dense<0.000000e+00> : vector<8x32xf32>
    %154 = tpu.matmul %152, %153, %cst_63 {dimension_numbers = #tpu.dot_dimension_numbers<[1], [0], [0], [1], [0, 0, 1, 1], [], []>} : vector<8x8xf32>, vector<8x32xf32>, vector<8x32xf32> -> vector<8x32xf32>
    %155 = arith.addf %137, %154 : vector<8x32xf32>
    %156 = vector.broadcast %6 : vector<1x32xf32> to vector<8x32xf32>
    %157 = arith.addf %155, %156 : vector<8x32xf32>
    %c8_64 = arith.constant 8 : index
    %c0_65 = arith.constant 0 : index
    %158 = vector.load %arg6[%c8_64, %c0_65] : memref<16x32xf32, #tpu.memory_space<vmem>>, vector<8x32xf32>
    tpu.vector_store %arg6[%c8_64, %c0_65], %157 {strides = array<i32>} : memref<16x32xf32, #tpu.memory_space<vmem>>, vector<8x32xf32>,
    return
  }
  func.func @transform_0(%arg0: i32) -> (i32, i32) {
    %c0_i32 = arith.constant 0 : i32
    %c0_i32_0 = arith.constant 0 : i32
    %c0_i32_1 = arith.constant 0 : i32
    return %c0_i32, %c0_i32_0 : i32, i32
  }
  func.func @transform_1(%arg0: i32) -> (i32, i32) {
    %c0_i32 = arith.constant 0 : i32
    %c0_i32_0 = arith.constant 0 : i32
    %c0_i32_1 = arith.constant 0 : i32
    return %c0_i32, %c0_i32_0 : i32, i32
  }
  func.func @transform_2(%arg0: i32) -> (i32, i32) {
    %c0_i32 = arith.constant 0 : i32
    %c0_i32_0 = arith.constant 0 : i32
    %c0_i32_1 = arith.constant 0 : i32
    return %c0_i32, %c0_i32_0 : i32, i32
  }
  func.func @transform_3(%arg0: i32) -> (i32, i32) {
    %c0_i32 = arith.constant 0 : i32
    %c0_i32_0 = arith.constant 0 : i32
    %c0_i32_1 = arith.constant 0 : i32
    return %c0_i32, %c0_i32_0 : i32, i32
  }
  func.func @transform_4(%arg0: i32) -> (i32, i32) {
    %c0_i32 = arith.constant 0 : i32
    %c0_i32_0 = arith.constant 0 : i32
    %c0_i32_1 = arith.constant 0 : i32
    return %c0_i32, %c0_i32_0 : i32, i32
  }
  func.func @transform_5(%arg0: i32) -> (i32, i32) {
    %c0_i32 = arith.constant 0 : i32
    %c0_i32_0 = arith.constant 0 : i32
    %c0_i32_1 = arith.constant 0 : i32
    return %c0_i32, %c0_i32_0 : i32, i32
  }
}

</mosaic_0001>

<bundles_post_ra>
// kernel: mha_pallas.1
= control target key start
LH: loop header
LB: loop body
LE: loop exit
PB: predicated region body
PF: predicated region fallthrough
CT: control target
= control target key end

     0   :  { %10 = vsyncpa [#allocation3], 0  ;;  %s2791_s0 = inlined_call_operand.hbm [shape: f32[16,32], index: 0, kind: input, shape index: {}]   ;;  %s2792_s1 = inlined_call_operand.hbm [shape: f32[32,128], index: 1, kind: input, shape index: {}]   ;;  %s2793_s2 = inlined_call_operand.vmem [shape: f32[1,128], index: 2, kind: input, shape index: {}]   ;;  %s2794_s3 = inlined_call_operand.hbm [shape: f32[32,32], index: 3, kind: input, shape index: {}]   ;;  %s2795_s4 = inlined_call_operand.vmem [shape: f32[1,32], index: 4, kind: input, shape index: {}]   ;;  %s2796_s5 = inlined_call_operand.hbm [shape: f32[16,32], index: 5, kind: output, shape index: {}]  }
   0x1   :  { %11 = vsyncpa [#allocation6], 0 }
   0x2   :  { %12 = vsyncpa [#allocation4], 0  ;;  %s2475_s18 = smov [#allocation5]   ;;  %s2476_s20 = smov [#allocation2]  }
   0x3   :  { %s30_s19 = sshll.u32 %s2475_s18, 4  ;;  %s18_s21 = sshll.u32 %s2476_s20, 4  ;;  %s31_s19 = int_to_ptr.vmem [resolvable:$true] %s30_s19  ;;  %s2524_s21 = int_to_ptr.vmem [resolvable:$true] %s18_s21 }
   0x4   :  { %s2381_s24 = scalar_lea.hbm %s2792_s1, 512 }
   0x5   :  { %p2382_p0 = scmp.ne.s32.totalorder %s2792_s1, %s2381_s24  ;;  %p2385_p1 = scmp.lt.u32.totalorder %s2381_s24, %s2792_s1 }
   0x7   :  { %p2387_p2 = pnand %p2385_p1, %p2382_p0 }
   0x9   :  { %2390 = shalt.err (!%p2387_p2)
}
   0xa   :  { %s2391_s29 = scalar_lea.vmem %s31_s19, 512  ;;  %p2396_p4 = scmp.lt.s32.totalorder %s31_s19, %s31_s19 }
   0xb   :  { %p2392_p3 = scmp.ne.s32.totalorder %s31_s19, %s2391_s29  ;;  %p2397_p5 = scmp.lt.s32.totalorder %s2391_s29, %s2391_s29 }
   0xd   :  { %p2398_p6 = por %p2397_p5, %p2396_p4 }
   0xf   :  { %p2399_p7 = pnand %p2398_p6, %p2392_p3 }
  0x11   :  { %2402 = shalt.err (!%p2399_p7)
}
  0x12   :  { %s2477_s30 = smov 128   ;;  %s2478_s6 = smov 8  }
  0x13   :  { %36 = dma.hbm_to_vmem [thread:$0]  %s2792_s1, 512, %s31_s19, [#allocation6], %s2477_s30, %s2477_s30, %s2478_s6  }
  0x14   :  { %s2403_s11 = scalar_lea.hbm %s2791_s0, 256 }
  0x15   :  { %p2404_p8 = scmp.ne.s32.totalorder %s2791_s0, %s2403_s11  ;;  %p2407_p9 = scmp.lt.u32.totalorder %s2403_s11, %s2791_s0 }
  0x17   :  { %p2409_p10 = pnand %p2407_p9, %p2404_p8 }
  0x19   :  { %2412 = shalt.err (!%p2409_p10)
}
  0x1a   :  { %s2413_s16 = scalar_lea.vmem %s2524_s21, 256  ;;  %p2418_p12 = scmp.lt.s32.totalorder %s2524_s21, %s2524_s21 }
  0x1b   :  { %p2414_p11 = scmp.ne.s32.totalorder %s2524_s21, %s2413_s16  ;;  %p2419_p13 = scmp.lt.s32.totalorder %s2413_s16, %s2413_s16 }
  0x1d   :  { %p2420_p0 = por %p2419_p13, %p2418_p12 }
  0x1f   :  { %p2421_p1 = pnand %p2420_p0, %p2414_p11 }
  0x21   :  { %2424 = shalt.err (!%p2421_p1)
}
  0x22   :  { %24 = dma.hbm_to_vmem [thread:$0]  %s2791_s0, 256, %s2524_s21, [#allocation3], %s2477_s30, %s2477_s30, %s2478_s6  }
  0x23   :  { %s2479_s18 = smov [#allocation7]   ;;  %s2425_s23 = scalar_lea.hbm %s2794_s3, 512 }
  0x24   :  { %s44_s19 = sshll.u32 %s2479_s18, 4  ;;  %p2426_p2 = scmp.ne.s32.totalorder %s2794_s3, %s2425_s23  ;;  %s45_s19 = int_to_ptr.vmem [resolvable:$true] %s44_s19 }
  0x25   :  { %p2429_p3 = scmp.lt.u32.totalorder %s2425_s23, %s2794_s3 }
  0x27   :  { %p2431_p4 = pnand %p2429_p3, %p2426_p2 }
  0x29   :  { %2434 = shalt.err (!%p2431_p4)
}
  0x2a   :  { %s2435_s28 = scalar_lea.vmem %s45_s19, 512  ;;  %p2440_p6 = scmp.lt.s32.totalorder %s45_s19, %s45_s19 }
  0x2b   :  { %p2436_p5 = scmp.ne.s32.totalorder %s45_s19, %s2435_s28  ;;  %p2441_p7 = scmp.lt.s32.totalorder %s2435_s28, %s2435_s28 }
  0x2d   :  { %p2442_p8 = por %p2441_p7, %p2440_p6 }
  0x2f   :  { %p2443_p9 = pnand %p2442_p8, %p2436_p5 }
  0x31   :  { %2446 = shalt.err (!%p2443_p9)
}
  0x32   :  { %50 = dma.hbm_to_vmem [thread:$0]  %s2794_s3, 512, %s45_s19, [#allocation6], %s2477_s30, %s2477_s30, %s2478_s6  }
  0x33   :  { %2469 = dma.done.wait [#allocation3], 256  }
  0x34   :  { %2470 = vsyncadd [#allocation3], 4294967040 }
  0x35   :  { %2471 = dma.done.wait [#allocation6], 1024  }
  0x36   :  { %2472 = vsyncadd [#allocation6], 4294966272  ;;  %vm75_vm0 = vcmask 261120   ;;  %v64_v0 = vld [vmem:[#allocation5] sm:$0xff]  ;;  %v65_v1 = vld [vmem:[#allocation5 + $0x8] sm:$0xff]  ;;  %v2480_v8 = vmov 0.0  }
  0x37   :  { %v66_v2 = vld [vmem:[#allocation5 + $0x10] sm:$0xff]  ;;  %v2322_v3 = vpack.c.bf16 %v65_v1, %v64_v0  ;;  %v67_v4 = vld [vmem:[#allocation5 + $0x18] sm:$0xff]  ;;  %2202 = vmatprep.subr.mxu1 %v2480_v8  ;;  %vm2481_vm1 = vmmov 0   ;;  %s2482_s7 = smov 120   ;;  %s2483_s8 = smov 96   ;;  %vm161_vm2 = vcmask 64512  }
  0x38   :  { %v62_v5 = vld [vmem:[#allocation2] sm:$0xff]  ;;  %v2326_v6 = vpack.c.bf16 %v67_v4, %v66_v2  ;;  %v63_v7 = vld [vmem:[#allocation2 + $0x8] sm:$0xff]  ;;  %2204 = vmatprep.mubr.msk.f32.mxu1 %vm2481_vm1, %v2480_v8  ;;  %s2484_s9 = smov 88   ;;  %s2486_s10 = smov 64   ;;  %v2620_v33 = vld [vmem:[#allocation7 + $0x8] sm:$0xff] }
  0x39   :  { %2199 = vmatprep.mubr.msk.f32.mxu0 %vm75_vm0, %v62_v5  ;;  %2323 = vmatprep.subr.bf16.mxu0 %v2322_v3  ;;  %v2101_v9 = vld [vmem:[%s2793_s2] ss:$0 sm:$0xff]  ;;  %s2485_s2 = smov 56   ;;  %s2487_s11 = smov 80   ;;  %v2632_v42 = vld [vmem:[#allocation7] sm:$0xff] }
  0x3a   :  { %2325 = vmatpush3.bf16.msra.mxu0 %v2322_v3  ;;  %s2488_s12 = smov 112   ;;  %s2489_s13 = smov 72   ;;  %v2666_v4 = vld [vmem:[#allocation7 + $0x10] sm:$0xff] }
  0x3b   :  { %2327 = vmatprep.subr.bf16.mxu0 %v2326_v6  ;;  %s2490_s14 = smov 104   ;;  %s2491_s15 = smov 48  }
  0x3c   :  { %s2492_s16 = smov 40  }
  0x3e   :  { %2329 = vmatpush3.bf16.msra.mxu0 %v2326_v6 }
  0x3f   :  { %2212 = vmatprep.subr.mxu0 %v2480_v8 }
  0x41   :  { %2200 = vmatmul.mubr.msk.f32.vlgmr.msra.gmra.mrb[0].mxu0 %vm75_vm0, %v63_v7 }
  0x42   :  { %2214 = vmatprep.mubr.msk.f32.mxu0 %vm2481_vm1, %v2480_v8 }
 0x114   :  { %v2201_v10 = vpop.f32.mrb[0].mxu0 }
 0x115   :  { %v2587_v11 = vadd.f32 %v2201_v10, %v2101_v9  ;;  %v148_v12 = vpop.f32.mrb[1].mxu0 }
 0x116   :  { %v2589_v13 = vadd.f32 %v2101_v9, %v148_v12 }
 0x118   :  { %324 = vrot.lane.b32.xlu1 %v2589_v13, %s2482_s7  ;;  %159 = vrot.lane.b32.xlu0 %v2589_v13, %s2483_s8 }
 0x11c   :  { %326 = vrot.lane.b32.xlu0 %v2589_v13, %s2484_s9 }
 0x18a   :  { %v160_v14 = vpop.permute.xlu0 %159  ;;  %v325_v16 = vpop.permute.xlu1 %324 }
 0x18b   :  { %2203 = vmatpush3.xpose.msk.msra.mxu1 %vm161_vm2, %v160_v14 }
 0x18c   :  { %2207 = vmatprep.subr.mxu1 %v2480_v8 }
 0x18e   :  { %2205 = vmatmul.mubr.msk.f32.vlgmr.msra.gmra.mrb[0].mxu1 %vm161_vm2, %v2589_v13  ;;  %v327_v15 = vpop.permute.xlu0 %326 }
 0x18f   :  { %2213 = vmatpush3.xpose.msk.msra.mxu0 %vm161_vm2, %v327_v15  ;;  %2209 = vmatprep.mubr.msk.f32.mxu1 %vm2481_vm1, %v2480_v8 }
 0x190   :  { %2222 = vmatprep.subr.mxu0 %v2480_v8 }
 0x192   :  { %2215 = vmatmul.mubr.msk.f32.vlgmr.msra.gmra.mrb[2].mxu0 %vm161_vm2, %v325_v16 }
 0x193   :  { %2224 = vmatprep.mubr.msk.f32.mxu0 %vm2481_vm1, %v2480_v8  ;;  %2223 = vmatpush3.msra.mxu0 %v2620_v33 }
 0x194   :  { %2232 = vmatprep.subr.mxu0 %v2480_v8 }
 0x261   :  { %v232_v17 = vpop.f32.mrb[0].mxu1 }
 0x262   :  { %v2206_v18 = vpop.f32.mrb[1].mxu1  ;;  %v236_v19 = vsel %vm161_vm2, %v232_v17, -inf }
 0x263   :  { %237 = vmax.xlane.f32.xlu1 %v236_v19 }
 0x265   :  { %v398_v20 = vpop.f32.mrb[2].mxu0 }
 0x266   :  { %v2216_v21 = vpop.f32.mrb[3].mxu0  ;;  %v402_v22 = vsel %vm161_vm2, %v398_v20, -inf }
 0x267   :  { %403 = vmax.xlane.f32.xlu0 %v402_v22 }
 0x2f0   :  { %v238_v23 = vpop.xlane.xlu1 %237 }
 0x2f1   :  { %v239_v24 = vsub.f32 %v232_v17, %v238_v23 }
 0x2f3   :  { %v240_v25 = vmul.f32 1.442695, %v239_v24 }
 0x2f4   :  { %v404_v26 = vpop.xlane.xlu0 %403 }
 0x2f5   :  { %2349 = vpow2.f32 %v240_v25  ;;  %v405_v27 = vsub.f32 %v398_v20, %v404_v26 }
 0x2f7   :  { %v406_v28 = vmul.f32 1.442695, %v405_v27  ;;  %v2698_v27 = vld [vmem:[#allocation7 + $0x18] sm:$0xff] }
 0x2f9   :  { %2351 = vpow2.f32 %v406_v28 }
 0x2ff   :  { %v2350_v29 = vpop.eup %2349 }
 0x300   :  { %v242_v30 = vsel %vm161_vm2, %v2350_v29, 0.0 }
 0x301   :  { %243 = vadd.xlane.f32.xlu0 %v242_v30 }
 0x303   :  { %v2352_v31 = vpop.eup %2351 }
 0x304   :  { %v408_v32 = vsel %vm161_vm2, %v2352_v31, 0.0 }
 0x305   :  { %409 = vadd.xlane.f32.xlu1 %v408_v32 }
 0x316   :  { %413 = vrot.lane.b32.xlu1 %v2589_v13, %s2485_s2 }
 0x317   :  { %247 = vrot.lane.b32.xlu0 %v2589_v13, %s2486_s10 }
 0x31a   :  { %638 = vrot.lane.b32.xlu1 %v2589_v13, %s2487_s11 }
 0x31b   :  { %636 = vrot.lane.b32.xlu0 %v2589_v13, %s2488_s12 }
 0x38e   :  { %v244_v34 = vpop.xlane.xlu0 %243 }
 0x38f   :  { %2353 = vrcp.f32 %v244_v34 }
 0x392   :  { %v410_v35 = vpop.xlane.xlu1 %409  ;;  %v248_v36 = vpop.permute.xlu0 %247 }
 0x393   :  { %2355 = vrcp.f32 %v410_v35  ;;  %2208 = vmatpush3.msra.mxu1 %v248_v36 }
 0x394   :  { %2217 = vmatprep.subr.mxu1 %v2480_v8 }
 0x396   :  { %v414_v39 = vpop.permute.xlu1 %413  ;;  %v637_v48 = vpop.permute.xlu0 %636 }
 0x399   :  { %v2354_v37 = vpop.eup %2353 }
 0x39a   :  { %v246_v38 = vmul.f32 %v2354_v37, %v2350_v29  ;;  %v639_v46 = vpop.permute.xlu1 %638 }
 0x39c   :  { %2210 = vmatmul.mubr.msk.f32.vlgmr.msra.gmra.mrb[2].mxu1 %vm161_vm2, %v246_v38 }
 0x39d   :  { %v2356_v40 = vpop.eup %2355  ;;  %2218 = vmatpush3.msra.mxu1 %v414_v39  ;;  %2219 = vmatprep.mubr.msk.f32.mxu1 %vm2481_vm1, %v2480_v8 }
 0x39e   :  { %v412_v41 = vmul.f32 %v2356_v40, %v2352_v31  ;;  %2227 = vmatprep.subr.mxu1 %v2480_v8 }
 0x3a0   :  { %2220 = vmatmul.mubr.msk.f32.vlgmr.msra.gmra.mrb[4].mxu1 %vm161_vm2, %v412_v41 }
 0x3a1   :  { %2229 = vmatprep.mubr.msk.f32.mxu1 %vm2481_vm1, %v2480_v8  ;;  %2228 = vmatpush3.msra.mxu1 %v2632_v42 }
 0x3a2   :  { %2237 = vmatprep.subr.mxu1 %v2480_v8 }
 0x46f   :  { %v319_v43 = vpop.f32.mrb[2].mxu1 }
 0x470   :  { %v2211_v44 = vpop.f32.mrb[3].mxu1  ;;  %2230 = vmatmul.mubr.msk.f32.vlgmr.msra.gmra.mrb[6].mxu1 %vm161_vm2, %v319_v43 }
 0x471   :  { %2239 = vmatprep.mubr.msk.f32.mxu1 %vm2481_vm1, %v2480_v8 }
 0x473   :  { %v485_v45 = vpop.f32.mrb[4].mxu1 }
 0x474   :  { %v2221_v47 = vpop.f32.mrb[5].mxu1  ;;  %2225 = vmatmul.mubr.msk.f32.vlgmr.msra.gmra.mrb[4].mxu0 %vm161_vm2, %v485_v45 }
 0x475   :  { %2233 = vmatpush3.xpose.msk.msra.mxu0 %vm161_vm2, %v639_v46  ;;  %2234 = vmatprep.mubr.msk.f32.mxu0 %vm2481_vm1, %v2480_v8 }
 0x476   :  { %2242 = vmatprep.subr.mxu0 %v2480_v8 }
 0x478   :  { %2235 = vmatmul.mubr.msk.f32.vlgmr.msra.gmra.mrb[6].mxu0 %vm161_vm2, %v637_v48  ;;  %v2721_v48 = vld [vmem:[%s2795_s4] ss:$0 sm:$0xff]  ;;  %s2493_s4 = smov [#allocation8]  }
 0x479   :  { %2244 = vmatprep.mubr.msk.f32.mxu0 %vm2481_vm1, %v2480_v8  ;;  %2243 = vmatpush3.msra.mxu0 %v2666_v4  ;;  %s2088_s18 = sshll.u32 %s2493_s4, 4  ;;  %s2089_s18 = int_to_ptr.vmem [resolvable:$true] %s2088_s18 }
 0x47a   :  { %2252 = vmatprep.subr.mxu0 %v2480_v8  ;;  %s2447_s19 = scalar_lea.vmem %s2089_s18, 256  ;;  %p2452_p11 = scmp.lt.s32.totalorder %s2089_s18, %s2089_s18 }
 0x47b   :  { %p2448_p10 = scmp.ne.s32.totalorder %s2089_s18, %s2447_s19  ;;  %p2453_p12 = scmp.lt.s32.totalorder %s2447_s19, %s2447_s19 }
 0x47d   :  { %p2454_p13 = por %p2453_p12, %p2452_p11 }
 0x47f   :  { %p2455_p0 = pnand %p2454_p13, %p2448_p10 }
 0x543   :  { %v632_v49 = vpop.f32.mrb[6].mxu1 }
 0x544   :  { %v2231_v50 = vpop.f32.mrb[7].mxu1 }
 0x547   :  { %v559_v51 = vpop.f32.mrb[4].mxu0 }
 0x548   :  { %v633_v52 = vadd.f32 %v632_v49, %v559_v51  ;;  %v2226_v53 = vpop.f32.mrb[5].mxu0 }
 0x54b   :  { %v710_v54 = vpop.f32.mrb[6].mxu0 }
 0x54c   :  { %v2236_v55 = vpop.f32.mrb[7].mxu0  ;;  %v714_v56 = vsel %vm161_vm2, %v710_v54, -inf }
 0x54d   :  { %715 = vmax.xlane.f32.xlu1 %v714_v56 }
 0x55e   :  { %878 = vrot.lane.b32.xlu1 %v2589_v13, %s2489_s13 }
 0x562   :  { %876 = vrot.lane.b32.xlu1 %v2589_v13, %s2490_s14 }
 0x566   :  { %1125 = vrot.lane.b32.xlu1 %v2587_v11, %s2483_s8 }
 0x5da   :  { %v716_v57 = vpop.xlane.xlu1 %715 }
 0x5db   :  { %v717_v58 = vsub.f32 %v710_v54, %v716_v57 }
 0x5dd   :  { %v718_v59 = vmul.f32 1.442695, %v717_v58 }
 0x5de   :  { %v879_v1 = vpop.permute.xlu1 %878 }
 0x5df   :  { %2357 = vpow2.f32 %v718_v59 }
 0x5e2   :  { %v877_v3 = vpop.permute.xlu1 %876 }
 0x5e6   :  { %v1126_v21 = vpop.permute.xlu1 %1125 }
 0x5e9   :  { %v2358_v60 = vpop.eup %2357 }
 0x5ea   :  { %v720_v61 = vsel %vm161_vm2, %v2358_v60, 0.0 }
 0x5eb   :  { %721 = vadd.xlane.f32.xlu0 %v720_v61 }
 0x601   :  { %725 = vrot.lane.b32.xlu0 %v2589_v13, %s2491_s15 }
 0x678   :  { %v722_v62 = vpop.xlane.xlu0 %721 }
 0x679   :  { %2359 = vrcp.f32 %v722_v62 }
 0x67c   :  { %v726_v63 = vpop.permute.xlu0 %725 }
 0x67d   :  { %2238 = vmatpush3.msra.mxu1 %v726_v63 }
 0x67e   :  { %2247 = vmatprep.subr.mxu1 %v2480_v8 }
 0x683   :  { %v2360_v0 = vpop.eup %2359 }
 0x684   :  { %v724_v2 = vmul.f32 %v2360_v0, %v2358_v60 }
 0x686   :  { %2240 = vmatmul.mubr.msk.f32.vlgmr.msra.gmra.mrb[8].mxu1 %vm161_vm2, %v724_v2 }
 0x687   :  { %2248 = vmatpush3.xpose.msk.msra.mxu1 %vm161_vm2, %v879_v1  ;;  %2249 = vmatprep.mubr.msk.f32.mxu1 %vm2481_vm1, %v2480_v8 }
 0x688   :  { %2257 = vmatprep.subr.mxu1 %v2480_v8 }
 0x68a   :  { %2250 = vmatmul.mubr.msk.f32.vlgmr.msra.gmra.mrb[10].mxu1 %vm161_vm2, %v877_v3 }
 0x68b   :  { %2259 = vmatprep.mubr.msk.f32.mxu1 %vm2481_vm1, %v2480_v8  ;;  %2258 = vmatpush3.msra.mxu1 %v2698_v27 }
 0x68c   :  { %2267 = vmatprep.subr.mxu1 %v2480_v8 }
 0x759   :  { %v797_v5 = vpop.f32.mrb[8].mxu1 }
 0x75a   :  { %v2241_v6 = vpop.f32.mrb[9].mxu1  ;;  %2245 = vmatmul.mubr.msk.f32.vlgmr.msra.gmra.mrb[8].mxu0 %vm161_vm2, %v797_v5 }
 0x75b   :  { %2254 = vmatprep.mubr.msk.f32.mxu0 %vm2481_vm1, %v2480_v8 }
 0x75d   :  { %v950_v7 = vpop.f32.mrb[10].mxu1 }
 0x75e   :  { %v2251_v9 = vpop.f32.mrb[11].mxu1  ;;  %v954_v10 = vsel %vm161_vm2, %v950_v7, -inf }
 0x75f   :  { %955 = vmax.xlane.f32.xlu0 %v954_v10 }
 0x775   :  { %965 = vrot.lane.b32.xlu0 %v2589_v13, %s2492_s16 }
 0x779   :  { %1291 = vrot.lane.b32.xlu0 %v2587_v11, %s2484_s9 }
 0x7ec   :  { %v956_v12 = vpop.xlane.xlu0 %955 }
 0x7ed   :  { %v957_v14 = vsub.f32 %v950_v7, %v956_v12 }
 0x7ef   :  { %v958_v15 = vmul.f32 1.442695, %v957_v14 }
 0x7f0   :  { %v966_v16 = vpop.permute.xlu0 %965 }
 0x7f1   :  { %2361 = vpow2.f32 %v958_v15  ;;  %2253 = vmatpush3.msra.mxu0 %v966_v16 }
 0x7f2   :  { %2262 = vmatprep.subr.mxu0 %v2480_v8 }
 0x7f4   :  { %v1292_v25 = vpop.permute.xlu0 %1291 }
 0x7fb   :  { %v2362_v17 = vpop.eup %2361 }
 0x7fc   :  { %v960_v18 = vsel %vm161_vm2, %v2362_v17, 0.0 }
 0x7fd   :  { %961 = vadd.xlane.f32.xlu1 %v960_v18 }
 0x80e   :  { %1289 = vrot.lane.b32.xlu1 %v2587_v11, %s2482_s7 }
 0x82d   :  { %v871_v19 = vpop.f32.mrb[8].mxu0 }
 0x82e   :  { %v875_v13 = vadd.f32 %v871_v19, %v633_v52  ;;  %v2246_v20 = vpop.f32.mrb[9].mxu0 }
 0x88a   :  { %v962_v22 = vpop.xlane.xlu1 %961 }
 0x88b   :  { %2363 = vrcp.f32 %v962_v22 }
 0x88e   :  { %v1290_v26 = vpop.permute.xlu1 %1289 }
 0x895   :  { %v2364_v23 = vpop.eup %2363 }
 0x896   :  { %v964_v24 = vmul.f32 %v2364_v23, %v2362_v17 }
 0x898   :  { %2255 = vmatmul.mubr.msk.f32.vlgmr.msra.gmra.mrb[10].mxu0 %vm161_vm2, %v964_v24 }
 0x899   :  { %2263 = vmatpush3.xpose.msk.msra.mxu0 %vm161_vm2, %v1126_v21  ;;  %2264 = vmatprep.mubr.msk.f32.mxu0 %vm2481_vm1, %v2480_v8 }
 0x89a   :  { %2272 = vmatprep.subr.mxu0 %v2480_v8 }
 0x89c   :  { %2265 = vmatmul.mubr.msk.f32.vlgmr.msra.gmra.mrb[12].mxu0 %vm161_vm2, %v2587_v11 }
 0x89d   :  { %2273 = vmatpush3.xpose.msk.msra.mxu0 %vm161_vm2, %v1292_v25  ;;  %2274 = vmatprep.mubr.msk.f32.mxu0 %vm2481_vm1, %v2480_v8 }
 0x89e   :  { %2282 = vmatprep.subr.mxu0 %v2480_v8 }
 0x8a0   :  { %2275 = vmatmul.mubr.msk.f32.vlgmr.msra.gmra.mrb[14].mxu0 %vm161_vm2, %v1290_v26 }
 0x8a1   :  { %2283 = vmatpush3.msra.mxu0 %v2620_v33  ;;  %2284 = vmatprep.mubr.msk.f32.mxu0 %vm2481_vm1, %v2480_v8 }
 0x8a2   :  { %2292 = vmatprep.subr.mxu0 %v2480_v8 }
 0x96b   :  { %v1037_v28 = vpop.f32.mrb[10].mxu0 }
 0x96c   :  { %v2256_v29 = vpop.f32.mrb[11].mxu0  ;;  %2260 = vmatmul.mubr.msk.f32.vlgmr.msra.gmra.mrb[12].mxu1 %vm161_vm2, %v1037_v28 }
 0x96d   :  { %2269 = vmatprep.mubr.msk.f32.mxu1 %vm2481_vm1, %v2480_v8 }
 0x96f   :  { %v1197_v30 = vpop.f32.mrb[12].mxu0 }
 0x970   :  { %v2266_v31 = vpop.f32.mrb[13].mxu0  ;;  %v1201_v32 = vsel %vm161_vm2, %v1197_v30, -inf }
 0x971   :  { %1202 = vmax.xlane.f32.xlu0 %v1201_v32 }
 0x973   :  { %v1363_v33 = vpop.f32.mrb[14].mxu0 }
 0x974   :  { %v2276_v34 = vpop.f32.mrb[15].mxu0  ;;  %v1367_v35 = vsel %vm161_vm2, %v1363_v33, -inf }
 0x975   :  { %1368 = vmax.xlane.f32.xlu1 %v1367_v35 }
 0x986   :  { %1212 = vrot.lane.b32.xlu1 %v2587_v11, %s2486_s10 }
 0x98a   :  { %1603 = vrot.lane.b32.xlu1 %v2587_v11, %s2487_s11 }
 0x98e   :  { %1601 = vrot.lane.b32.xlu1 %v2587_v11, %s2488_s12 }
 0x9fe   :  { %v1203_v36 = vpop.xlane.xlu0 %1202 }
 0x9ff   :  { %v1204_v37 = vsub.f32 %v1197_v30, %v1203_v36 }
 0xa01   :  { %v1205_v38 = vmul.f32 1.442695, %v1204_v37 }
 0xa02   :  { %v1369_v39 = vpop.xlane.xlu1 %1368 }
 0xa03   :  { %2365 = vpow2.f32 %v1205_v38  ;;  %v1370_v40 = vsub.f32 %v1363_v33, %v1369_v39 }
 0xa05   :  { %v1371_v41 = vmul.f32 1.442695, %v1370_v40 }
 0xa06   :  { %v1213_v43 = vpop.permute.xlu1 %1212 }
 0xa07   :  { %2367 = vpow2.f32 %v1371_v41  ;;  %2268 = vmatpush3.msra.mxu1 %v1213_v43 }
 0xa08   :  { %2277 = vmatprep.subr.mxu1 %v2480_v8 }
 0xa0a   :  { %v1604_v62 = vpop.permute.xlu1 %1603 }
 0xa0d   :  { %v2366_v44 = vpop.eup %2365 }
 0xa0e   :  { %v1207_v45 = vsel %vm161_vm2, %v2366_v44, 0.0 }
 0xa0f   :  { %1208 = vadd.xlane.f32.xlu0 %v1207_v45 }
 0xa11   :  { %v2368_v46 = vpop.eup %2367 }
 0xa12   :  { %v1373_v47 = vsel %vm161_vm2, %v2368_v46, 0.0 }
 0xa13   :  { %1374 = vadd.xlane.f32.xlu0 %v1373_v47 }
 0xa29   :  { %1378 = vrot.lane.b32.xlu0 %v2587_v11, %s2485_s2 }
 0xa3f   :  { %v1111_v49 = vpop.f32.mrb[12].mxu1 }
 0xa40   :  { %v1115_v50 = vadd.f32 %v1111_v49, %v875_v13  ;;  %v2261_v51 = vpop.f32.mrb[13].mxu1 }
 0xa42   :  { %v1122_v52 = vadd.f32 %v2721_v48, %v1115_v50 }
 0xa44   :  { %1123 = vst.msk [vmem:[#allocation8] sm:$0xff] %vm75_vm0, %v1122_v52 }
 0xa9c   :  { %v1209_v53 = vpop.xlane.xlu0 %1208 }
 0xa9d   :  { %2369 = vrcp.f32 %v1209_v53 }
 0xaa0   :  { %v1375_v54 = vpop.xlane.xlu0 %1374 }
 0xaa1   :  { %2371 = vrcp.f32 %v1375_v54 }
 0xaa4   :  { %v1379_v57 = vpop.permute.xlu0 %1378 }
 0xaa7   :  { %v2370_v55 = vpop.eup %2369 }
 0xaa8   :  { %v1211_v56 = vmul.f32 %v2370_v55, %v2366_v44 }
 0xaaa   :  { %2270 = vmatmul.mubr.msk.f32.vlgmr.msra.gmra.mrb[14].mxu1 %vm161_vm2, %v1211_v56 }
 0xaab   :  { %v2372_v58 = vpop.eup %2371  ;;  %2278 = vmatpush3.msra.mxu1 %v1379_v57  ;;  %2279 = vmatprep.mubr.msk.f32.mxu1 %vm2481_vm1, %v2480_v8 }
 0xaac   :  { %v1377_v59 = vmul.f32 %v2372_v58, %v2368_v46  ;;  %2287 = vmatprep.subr.mxu1 %v2480_v8 }
 0xaae   :  { %2280 = vmatmul.mubr.msk.f32.vlgmr.msra.gmra.mrb[16].mxu1 %vm161_vm2, %v1377_v59 }
 0xaaf   :  { %2288 = vmatpush3.msra.mxu1 %v2632_v42  ;;  %2289 = vmatprep.mubr.msk.f32.mxu1 %vm2481_vm1, %v2480_v8  ;;  %v1602_v42 = vpop.permute.xlu1 %1601 }
 0xab0   :  { %2297 = vmatprep.subr.mxu1 %v2480_v8 }
 0xb7d   :  { %v1284_v60 = vpop.f32.mrb[14].mxu1 }
 0xb7e   :  { %v2271_v61 = vpop.f32.mrb[15].mxu1  ;;  %2290 = vmatmul.mubr.msk.f32.vlgmr.msra.gmra.mrb[18].mxu1 %vm161_vm2, %v1284_v60 }
 0xb7f   :  { %2299 = vmatprep.mubr.msk.f32.mxu1 %vm2481_vm1, %v2480_v8 }
 0xb81   :  { %v1450_v63 = vpop.f32.mrb[16].mxu1 }
 0xb82   :  { %v2281_v0 = vpop.f32.mrb[17].mxu1  ;;  %2285 = vmatmul.mubr.msk.f32.vlgmr.msra.gmra.mrb[16].mxu0 %vm161_vm2, %v1450_v63 }
 0xb83   :  { %2293 = vmatpush3.xpose.msk.msra.mxu0 %vm161_vm2, %v1604_v62  ;;  %2294 = vmatprep.mubr.msk.f32.mxu0 %vm2481_vm1, %v2480_v8 }
 0xb84   :  { %2302 = vmatprep.subr.mxu0 %v2480_v8 }
 0xb86   :  { %2295 = vmatmul.mubr.msk.f32.vlgmr.msra.gmra.mrb[18].mxu0 %vm161_vm2, %v1602_v42 }
 0xb87   :  { %2303 = vmatpush3.msra.mxu0 %v2666_v4  ;;  %2304 = vmatprep.mubr.msk.f32.mxu0 %vm2481_vm1, %v2480_v8 }
 0xb88   :  { %2312 = vmatprep.subr.mxu0 %v2480_v8 }
 0xc51   :  { %v1597_v1 = vpop.f32.mrb[18].mxu1 }
 0xc52   :  { %v2291_v2 = vpop.f32.mrb[19].mxu1 }
 0xc55   :  { %v1524_v3 = vpop.f32.mrb[16].mxu0 }
 0xc56   :  { %v1598_v5 = vadd.f32 %v1597_v1, %v1524_v3  ;;  %v2286_v6 = vpop.f32.mrb[17].mxu0 }
 0xc59   :  { %v1675_v7 = vpop.f32.mrb[18].mxu0 }
 0xc5a   :  { %v2296_v9 = vpop.f32.mrb[19].mxu0  ;;  %v1679_v10 = vsel %vm161_vm2, %v1675_v7, -inf }
 0xc5b   :  { %1680 = vmax.xlane.f32.xlu0 %v1679_v10 }
 0xc71   :  { %1690 = vrot.lane.b32.xlu0 %v2587_v11, %s2491_s15 }
 0xc75   :  { %1841 = vrot.lane.b32.xlu0 %v2587_v11, %s2490_s14 }
 0xce8   :  { %v1681_v4 = vpop.xlane.xlu0 %1680 }
 0xce9   :  { %v1682_v12 = vsub.f32 %v1675_v7, %v1681_v4 }
 0xceb   :  { %v1683_v14 = vmul.f32 1.442695, %v1682_v12 }
 0xcec   :  { %v1691_v15 = vpop.permute.xlu0 %1690 }
 0xced   :  { %2373 = vpow2.f32 %v1683_v14  ;;  %2298 = vmatpush3.msra.mxu1 %v1691_v15 }
 0xcee   :  { %2307 = vmatprep.subr.mxu1 %v2480_v8 }
 0xcf0   :  { %v1842_v21 = vpop.permute.xlu0 %1841 }
 0xcf7   :  { %v2374_v16 = vpop.eup %2373 }
 0xcf8   :  { %v1685_v17 = vsel %vm161_vm2, %v2374_v16, 0.0 }
 0xcf9   :  { %1686 = vadd.xlane.f32.xlu1 %v1685_v17 }
 0xd0a   :  { %1843 = vrot.lane.b32.xlu1 %v2587_v11, %s2489_s13 }
 0xd86   :  { %v1687_v18 = vpop.xlane.xlu1 %1686 }
 0xd87   :  { %2375 = vrcp.f32 %v1687_v18 }
 0xd8a   :  { %v1844_v20 = vpop.permute.xlu1 %1843 }
 0xd91   :  { %v2376_v19 = vpop.eup %2375 }
 0xd92   :  { %v1689_v13 = vmul.f32 %v2376_v19, %v2374_v16 }
 0xd94   :  { %2300 = vmatmul.mubr.msk.f32.vlgmr.msra.gmra.mrb[20].mxu1 %vm161_vm2, %v1689_v13 }
 0xd95   :  { %2308 = vmatpush3.xpose.msk.msra.mxu1 %vm161_vm2, %v1844_v20  ;;  %2309 = vmatprep.mubr.msk.f32.mxu1 %vm2481_vm1, %v2480_v8 }
 0xd96   :  { %2317 = vmatprep.subr.mxu1 %v2480_v8 }
 0xd98   :  { %2310 = vmatmul.mubr.msk.f32.vlgmr.msra.gmra.mrb[22].mxu1 %vm161_vm2, %v1842_v21 }
 0xd99   :  { %2318 = vmatpush3.msra.mxu1 %v2698_v27  ;;  %2319 = vmatprep.mubr.msk.f32.mxu1 %vm2481_vm1, %v2480_v8 }
 0xe67   :  { %v1762_v22 = vpop.f32.mrb[20].mxu1 }
 0xe68   :  { %v2301_v23 = vpop.f32.mrb[21].mxu1  ;;  %2305 = vmatmul.mubr.msk.f32.vlgmr.msra.gmra.mrb[20].mxu0 %vm161_vm2, %v1762_v22 }
 0xe69   :  { %2314 = vmatprep.mubr.msk.f32.mxu0 %vm2481_vm1, %v2480_v8 }
 0xe6b   :  { %v1915_v24 = vpop.f32.mrb[22].mxu1 }
 0xe6c   :  { %v2311_v25 = vpop.f32.mrb[23].mxu1  ;;  %v1919_v26 = vsel %vm161_vm2, %v1915_v24, -inf }
 0xe6d   :  { %1920 = vmax.xlane.f32.xlu1 %v1919_v26 }
 0xefa   :  { %v1921_v28 = vpop.xlane.xlu1 %1920 }
 0xefb   :  { %v1922_v29 = vsub.f32 %v1915_v24, %v1921_v28 }
 0xefd   :  { %v1923_v30 = vmul.f32 1.442695, %v1922_v29 }
 0xeff   :  { %2377 = vpow2.f32 %v1923_v30 }
 0xf09   :  { %v2378_v27 = vpop.eup %2377 }
 0xf0a   :  { %v1925_v31 = vsel %vm161_vm2, %v2378_v27, 0.0 }
 0xf0b   :  { %1926 = vadd.xlane.f32.xlu0 %v1925_v31 }
 0xf21   :  { %1930 = vrot.lane.b32.xlu0 %v2587_v11, %s2492_s16 }
 0xf3b   :  { %v1836_v32 = vpop.f32.mrb[20].mxu0 }
 0xf3c   :  { %v1840_v33 = vadd.f32 %v1836_v32, %v1598_v5  ;;  %v2306_v34 = vpop.f32.mrb[21].mxu0 }
 0xf98   :  { %v1927_v8 = vpop.xlane.xlu0 %1926 }
 0xf99   :  { %2379 = vrcp.f32 %v1927_v8 }
 0xf9c   :  { %v1931_v35 = vpop.permute.xlu0 %1930 }
 0xf9d   :  { %2313 = vmatpush3.msra.mxu0 %v1931_v35 }
 0xfa3   :  { %v2380_v36 = vpop.eup %2379 }
 0xfa4   :  { %v1929_v37 = vmul.f32 %v2380_v36, %v2378_v27 }
 0xfa6   :  { %2315 = vmatmul.mubr.msk.f32.vlgmr.msra.gmra.mrb[22].mxu0 %vm161_vm2, %v1929_v37 }
0x1079   :  { %v2002_v38 = vpop.f32.mrb[22].mxu0 }
0x107a   :  { %v2316_v39 = vpop.f32.mrb[23].mxu0  ;;  %2320 = vmatmul.mubr.msk.f32.vlgmr.msra.gmra.mrb[24].mxu1 %vm161_vm2, %v2002_v38 }
0x114d   :  { %v2076_v40 = vpop.f32.mrb[24].mxu1 }
0x114e   :  { %v2080_v41 = vadd.f32 %v2076_v40, %v1840_v33  ;;  %v2321_v11 = vpop.f32.mrb[25].mxu1 }
0x1150   :  { %v2081_v43 = vadd.f32 %v2721_v48, %v2080_v41 }
0x1152   :  { %2082 = vst.msk [vmem:[#allocation8 + $0x8] sm:$0xff] %vm75_vm0, %v2081_v43 }
0x1153   :  { %2458 = shalt.err (!%p2455_p0)
}
0x1154   :  { %s2459_s23 = scalar_lea.hbm %s2796_s5, 256 }
0x1155   :  { %p2460_p1 = scmp.ne.s32.totalorder %s2796_s5, %s2459_s23  ;;  %p2463_p2 = scmp.lt.u32.totalorder %s2459_s23, %s2796_s5 }
0x1157   :  { %p2465_p3 = pnand %p2463_p2, %p2460_p1 }
0x1159   :  { %2468 = shalt.err (!%p2465_p3)
}
0x115a   :  { %2094 = dma.vmem_to_hbm [thread:$0]  %s2089_s18, 256, %s2796_s5, [#allocation4], %s2477_s30, %s2477_s30, %s2478_s6  }
0x115b   :  { %2473 = dma.done.wait [#allocation4], 256  }
0x115c   :  { %2474 = vsyncadd [#allocation4], 4294967040 }
0x115d   :  { %2098 = vsyncpa [#allocation3], 1 }
0x115e   :  { %2099 = vsyncpa [#allocation6], 1 }
0x115f   :  { %2100 = vsyncpa [#allocation4], 1 }

</bundles_post_ra>
